<compile_context>
chip_gen: v5e
topology: v5e:2x2
jax: 0.10.0
libtpu: 0.0.40
codegen_flags: <defaults>
</compile_context>

<pallas_src>
import jax
import jax.numpy as jnp
from jax.experimental import pallas as pl
from jax.experimental.pallas import tpu as pltpu

_MAX_BLOCK_B = 8192  # rows per grid step; X tile = 1 MiB f32, well inside VMEM on all gens


def mlp_kernel(x_ref, w1_ref, b1_ref, w2_ref, b2_ref, w3_ref, b3_ref, o_ref):
    # Layers 1 & 2: bf16 MXU matmuls with f32 accumulation, tanh on the EUP.
    # (Optionally h1/h2 could stay bf16 through tanh on v6e/v7x; not the bottleneck.)
    x = x_ref[...].astype(jnp.bfloat16)  # no-op if the caller already passed bf16
    h1 = jnp.tanh(
        jnp.dot(x, w1_ref[...], preferred_element_type=jnp.float32) + b1_ref[...]
    )
    h2 = jnp.tanh(
        jnp.dot(h1.astype(jnp.bfloat16), w2_ref[...],
                preferred_element_type=jnp.float32) + b2_ref[...]
    )
    # Layer 3: (1, hid) . (block_b, hid)^T -> (1, block_b) lane-dense logits row.
    logits = jax.lax.dot_general(
        w3_ref[...], h2.astype(jnp.bfloat16),
        dimension_numbers=(((1,), (1,)), ((), ())),
        preferred_element_type=jnp.float32,
    ) + b3_ref[...]                      # b3 is (1, 1), broadcasts over lanes
    o_ref[...] = jax.nn.sigmoid(logits).astype(o_ref.dtype)   # (1, block_b) store


def _pick_block_b(B, max_block=_MAX_BLOCK_B):
    """Fewer, fatter grid steps; >= 2 steps whenever the batch is splittable."""
    if B <= 16:
        return B                                  # single tiny tile; nothing to split
    num_steps = max(2, -(-B // max_block))        # >= 2 so both v7x TCs get work
    block_b = -(-B // num_steps)                  # balanced tiles
    return -(-block_b // 8) * 8                   # sublane-align; wrapper pads the tail


def mlp_forward(x, w1, b1, w2, b2, w3, b3, *, block_b=None):
    B, in_f = x.shape
    hid = w1.shape[1]
    if x.dtype not in (jnp.float32, jnp.bfloat16):
        x = x.astype(jnp.float32)
    if block_b is None:
        block_b = _pick_block_b(B)
    num_steps = -(-B // block_b)
    B_pad = num_steps * block_b
    if B_pad != B:
        # Ragged batch: zero-pad to a whole number of tiles, slice the tail off below.
        x = jnp.pad(x, ((0, B_pad - B), (0, 0)))

    # MXU-native bf16 weights (tiny, resident across the grid); f32 biases kept 2-D.
    w1b = w1.astype(jnp.bfloat16)
    w2b = w2.astype(jnp.bfloat16)
    w3_row = w3.reshape(1, hid).astype(jnp.bfloat16)   # (hid, 1) column -> (1, hid) row
    b1_2d = b1.reshape(1, hid).astype(jnp.float32)
    b2_2d = b2.reshape(1, hid).astype(jnp.float32)
    b3_2d = b3.reshape(1, 1).astype(jnp.float32)

    cost = pl.CostEstimate(
        flops=2 * B_pad * (in_f * hid + hid * hid + hid),
        transcendentals=B_pad * (2 * hid + 1),
        bytes_accessed=(
            B_pad * in_f * x.dtype.itemsize              # X (dominant stream)
            + (in_f * hid + hid * hid + hid) * 2         # bf16 weights
            + (2 * hid + 1) * 4                          # biases
            + B_pad * 4                                  # unpadded output
        ),
    )

    out = pl.pallas_call(
        mlp_kernel,
        out_shape=jax.ShapeDtypeStruct((num_steps, 1, block_b), jnp.float32),
        grid_spec=pltpu.PrefetchScalarGridSpec(
            num_scalar_prefetch=0,
            grid=(num_steps,),
            in_specs=[
                pl.BlockSpec((block_b, in_f), lambda i: (i, 0)),  # X tile
                pl.BlockSpec((in_f, hid), lambda i: (0, 0)),      # W1 (resident)
                pl.BlockSpec((1, hid), lambda i: (0, 0)),         # b1
                pl.BlockSpec((hid, hid), lambda i: (0, 0)),       # W2 (resident)
                pl.BlockSpec((1, hid), lambda i: (0, 0)),         # b2
                pl.BlockSpec((1, hid), lambda i: (0, 0)),         # W3 row (unpadded)
                pl.BlockSpec((1, 1), lambda i: (0, 0)),           # b3
            ],
            # Leading dim squeezed: kernel sees a (1, block_b) lane-dense row.
            out_specs=pl.BlockSpec((None, 1, block_b), lambda i: (i, 0, 0)),
        ),
        compiler_params=pltpu.CompilerParams(
            dimension_semantics=("parallel",),
        ),
        cost_estimate=cost,
    )(x, w1b, b1_2d, w2b, b2_2d, w3_row, b3_2d)

    # (num_steps, 1, block_b) -> (B_pad, 1) preserves batch order; drop pad rows.
    return out.reshape(B_pad, 1)[:B]


def init_linear(key, in_features, out_features):
    # PyTorch nn.Linear default init: U(-1/sqrt(in), 1/sqrt(in)) for W and b.
    kw, kb = jax.random.split(key)
    bound = 1.0 / (in_features ** 0.5)
    # Stored as (in, out) so the kernel computes X @ W.
    w = jax.random.uniform(kw, (in_features, out_features), jnp.float32,
                           minval=-bound, maxval=bound)
    b = jax.random.uniform(kb, (out_features,), jnp.float32,
                           minval=-bound, maxval=bound)
    return w, b


if __name__ == "__main__":
    input_size = 32
    hidden_size = 32
    num_layers = 1
    assert num_layers == 1, "must be 1 for now"

    key = jax.random.PRNGKey(0)
    kx, k1, k2, k3 = jax.random.split(key, 4)

    w1, b1 = init_linear(k1, input_size, hidden_size)
    w2, b2 = init_linear(k2, hidden_size, hidden_size)
    w3, b3 = init_linear(k3, hidden_size, 1)

    def reference(x):
        # Pure-JAX reference mirroring the kernel's bf16-input / f32-accumulate
        # numerics (eval-mode dropout = identity).
        xb = x.astype(jnp.bfloat16)
        w1b, w2b, w3b = (w.astype(jnp.bfloat16) for w in (w1, w2, w3))
        h1 = jnp.tanh(jnp.dot(xb, w1b, preferred_element_type=jnp.float32) + b1)
        h2 = jnp.tanh(jnp.dot(h1.astype(jnp.bfloat16), w2b,
                              preferred_element_type=jnp.float32) + b2)
        logits = jnp.dot(h2.astype(jnp.bfloat16), w3b,
                         preferred_element_type=jnp.float32) + b3
        return jax.nn.sigmoid(logits)

    # Single-tile small batch, ragged (padded) batch, even two-step batch (f32 and
    # bf16 producer paths).
    for batch, dtype in ((8, jnp.float32), (1000, jnp.float32),
                         (1024, jnp.float32), (1024, jnp.bfloat16)):
        x = jax.random.normal(kx, (batch, input_size), jnp.float32).astype(dtype)
        out = jax.block_until_ready(mlp_forward(x, w1, b1, w2, b2, w3, b3))
        assert out.shape == (batch, 1), out.shape
        ref = reference(x)
        err = float(jnp.max(jnp.abs(out - ref)))
        assert err < 2e-3, (
            f"mismatch vs reference at batch={batch} dtype={dtype}: max abs err {err}"
        )

    print("KERNEL_OK")
</pallas_src>

<mosaic_0001>
module attributes {stable_mosaic.version = 11 : i64} {
  func.func @mlp_kernel(%arg0: i32, %arg1: memref<8x32xf32, #tpu.memory_space<vmem>>, %arg2: memref<32x32xbf16, #tpu.memory_space<vmem>>, %arg3: memref<1x32xf32, #tpu.memory_space<vmem>>, %arg4: memref<32x32xbf16, #tpu.memory_space<vmem>>, %arg5: memref<1x32xf32, #tpu.memory_space<vmem>>, %arg6: memref<1x32xbf16, #tpu.memory_space<vmem>>, %arg7: memref<1x1xf32, #tpu.memory_space<vmem>>, %arg8: memref<1x1x8xf32, #tpu.memory_space<vmem>>) attributes {dimension_semantics = [#tpu.dimension_semantics<parallel>], iteration_bounds = array<i64: 1>, scalar_prefetch = 0 : i64, scratch_operands = 0 : i64, tpu.core_type = #tpu.core_type<tc>, window_params = [{transform_indices = @transform_0, window_bounds = array<i64: 8, 32>}, {pipeline_mode = #tpu.pipeline_mode<synchronous>, transform_indices = @transform_1, window_bounds = array<i64: 32, 32>}, {pipeline_mode = #tpu.pipeline_mode<synchronous>, transform_indices = @transform_2, window_bounds = array<i64: 1, 32>}, {pipeline_mode = #tpu.pipeline_mode<synchronous>, transform_indices = @transform_3, window_bounds = array<i64: 32, 32>}, {pipeline_mode = #tpu.pipeline_mode<synchronous>, transform_indices = @transform_4, window_bounds = array<i64: 1, 32>}, {pipeline_mode = #tpu.pipeline_mode<synchronous>, transform_indices = @transform_5, window_bounds = array<i64: 1, 32>}, {pipeline_mode = #tpu.pipeline_mode<synchronous>, transform_indices = @transform_6, window_bounds = array<i64: 1, 1>}, {transform_indices = @transform_7, window_bounds = array<i64: 1, 1, 8>}]} {
    %c0 = arith.constant 0 : index
    %c0_0 = arith.constant 0 : index
    %0 = vector.load %arg1[%c0, %c0_0] : memref<8x32xf32, #tpu.memory_space<vmem>>, vector<8x32xf32>
    %1 = arith.truncf %0 : vector<8x32xf32> to vector<8x32xbf16>
    %c0_1 = arith.constant 0 : index
    %c0_2 = arith.constant 0 : index
    %2 = vector.load %arg2[%c0_1, %c0_2] : memref<32x32xbf16, #tpu.memory_space<vmem>>, vector<32x32xbf16>
    %cst = arith.constant dense<0.000000e+00> : vector<8x32xf32>
    %3 = tpu.matmul %1, %2, %cst {dimension_numbers = #tpu.dot_dimension_numbers<[1], [0], [0], [1], [0, 0, 1, 1], [], []>} : vector<8x32xbf16>, vector<32x32xbf16>, vector<8x32xf32> -> vector<8x32xf32>
    %c0_3 = arith.constant 0 : index
    %c0_4 = arith.constant 0 : index
    %4 = vector.load %arg3[%c0_3, %c0_4] : memref<1x32xf32, #tpu.memory_space<vmem>>, vector<1x32xf32>
    %5 = vector.broadcast %4 : vector<1x32xf32> to vector<8x32xf32>
    %6 = arith.addf %3, %5 : vector<8x32xf32>
    %7 = math.tanh %6 : vector<8x32xf32>
    %8 = arith.truncf %7 : vector<8x32xf32> to vector<8x32xbf16>
    %c0_5 = arith.constant 0 : index
    %c0_6 = arith.constant 0 : index
    %9 = vector.load %arg4[%c0_5, %c0_6] : memref<32x32xbf16, #tpu.memory_space<vmem>>, vector<32x32xbf16>
    %cst_7 = arith.constant dense<0.000000e+00> : vector<8x32xf32>
    %10 = tpu.matmul %8, %9, %cst_7 {dimension_numbers = #tpu.dot_dimension_numbers<[1], [0], [0], [1], [0, 0, 1, 1], [], []>} : vector<8x32xbf16>, vector<32x32xbf16>, vector<8x32xf32> -> vector<8x32xf32>
    %c0_8 = arith.constant 0 : index
    %c0_9 = arith.constant 0 : index
    %11 = vector.load %arg5[%c0_8, %c0_9] : memref<1x32xf32, #tpu.memory_space<vmem>>, vector<1x32xf32>
    %12 = vector.broadcast %11 : vector<1x32xf32> to vector<8x32xf32>
    %13 = arith.addf %10, %12 : vector<8x32xf32>
    %14 = math.tanh %13 : vector<8x32xf32>
    %c0_10 = arith.constant 0 : index
    %c0_11 = arith.constant 0 : index
    %15 = vector.load %arg6[%c0_10, %c0_11] : memref<1x32xbf16, #tpu.memory_space<vmem>>, vector<1x32xbf16>
    %16 = arith.truncf %14 : vector<8x32xf32> to vector<8x32xbf16>
    %cst_12 = arith.constant dense<0.000000e+00> : vector<1x8xf32>
    %17 = tpu.matmul %15, %16, %cst_12 {dimension_numbers = #tpu.dot_dimension_numbers<[1], [1], [0], [0], [0, 0, 1, 0], [], []>} : vector<1x32xbf16>, vector<8x32xbf16>, vector<1x8xf32> -> vector<1x8xf32>
    %c0_13 = arith.constant 0 : index
    %c0_14 = arith.constant 0 : index
    %18 = vector.load %arg7[%c0_13, %c0_14] : memref<1x1xf32, #tpu.memory_space<vmem>>, vector<1x1xf32>
    %19 = vector.broadcast %18 : vector<1x1xf32> to vector<1x8xf32>
    %20 = arith.addf %17, %19 : vector<1x8xf32>
    %21 = arith.negf %20 : vector<1x8xf32>
    %22 = math.exp %21 : vector<1x8xf32>
    %cst_15 = arith.constant 1.000000e+00 : f32
    %23 = vector.broadcast %cst_15 : f32 to vector<1x8xf32>
    %24 = arith.addf %23, %22 : vector<1x8xf32>
    %25 = arith.divf %23, %24 : vector<1x8xf32>
    %c0_16 = arith.constant 0 : index
    %c0_17 = arith.constant 0 : index
    %c0_18 = arith.constant 0 : index
    %26 = vector.load %arg8[%c0_16, %c0_17, %c0_18] : memref<1x1x8xf32, #tpu.memory_space<vmem>>, vector<1x1x8xf32>
    %27 = vector.shape_cast %26 : vector<1x1x8xf32> to vector<1x8xf32>
    %28 = vector.shape_cast %25 : vector<1x8xf32> to vector<1x1x8xf32>
    tpu.vector_store %arg8[%c0_16, %c0_17, %c0_18], %28 {strides = array<i32>} : memref<1x1x8xf32, #tpu.memory_space<vmem>>, vector<1x1x8xf32>,
    return
  }
  func.func @transform_0(%arg0: i32) -> (i32, i32) {
    %c0_i32 = arith.constant 0 : i32
    %c0_i32_0 = arith.constant 0 : i32
    return %arg0, %c0_i32 : i32, i32
  }
  func.func @transform_1(%arg0: i32) -> (i32, i32) {
    %c0_i32 = arith.constant 0 : i32
    %c0_i32_0 = arith.constant 0 : i32
    %c0_i32_1 = arith.constant 0 : i32
    return %c0_i32, %c0_i32_0 : i32, i32
  }
  func.func @transform_2(%arg0: i32) -> (i32, i32) {
    %c0_i32 = arith.constant 0 : i32
    %c0_i32_0 = arith.constant 0 : i32
    %c0_i32_1 = arith.constant 0 : i32
    return %c0_i32, %c0_i32_0 : i32, i32
  }
  func.func @transform_3(%arg0: i32) -> (i32, i32) {
    %c0_i32 = arith.constant 0 : i32
    %c0_i32_0 = arith.constant 0 : i32
    %c0_i32_1 = arith.constant 0 : i32
    return %c0_i32, %c0_i32_0 : i32, i32
  }
  func.func @transform_4(%arg0: i32) -> (i32, i32) {
    %c0_i32 = arith.constant 0 : i32
    %c0_i32_0 = arith.constant 0 : i32
    %c0_i32_1 = arith.constant 0 : i32
    return %c0_i32, %c0_i32_0 : i32, i32
  }
  func.func @transform_5(%arg0: i32) -> (i32, i32) {
    %c0_i32 = arith.constant 0 : i32
    %c0_i32_0 = arith.constant 0 : i32
    %c0_i32_1 = arith.constant 0 : i32
    return %c0_i32, %c0_i32_0 : i32, i32
  }
  func.func @transform_6(%arg0: i32) -> (i32, i32) {
    %c0_i32 = arith.constant 0 : i32
    %c0_i32_0 = arith.constant 0 : i32
    %c0_i32_1 = arith.constant 0 : i32
    return %c0_i32, %c0_i32_0 : i32, i32
  }
  func.func @transform_7(%arg0: i32) -> (i32, i32, i32) {
    %c0_i32 = arith.constant 0 : i32
    %c0_i32_0 = arith.constant 0 : i32
    %c0_i32_1 = arith.constant 0 : i32
    return %arg0, %c0_i32, %c0_i32_0 : i32, i32, i32
  }
}

</mosaic_0001>

<bundles_post_ra>
// kernel: tpu_custom_call.1
= control target key start
LH: loop header
LB: loop body
LE: loop exit
PB: predicated region body
PF: predicated region fallthrough
CT: control target
= control target key end

     0   :  { %s439_s0 = inlined_call_operand.hbm [shape: f32[8,32], index: 0, kind: input, shape index: {}]   ;;  %s440_s1 = inlined_call_operand.hbm [shape: bf16[32,32], index: 1, kind: input, shape index: {}]   ;;  %s441_s2 = inlined_call_operand.vmem [shape: f32[1,32], index: 2, kind: input, shape index: {}]   ;;  %s442_s3 = inlined_call_operand.hbm [shape: bf16[32,32], index: 3, kind: input, shape index: {}]   ;;  %s443_s4 = inlined_call_operand.vmem [shape: f32[1,32], index: 4, kind: input, shape index: {}]   ;;  %s444_s5 = inlined_call_operand.vmem [shape: bf16[1,32], index: 5, kind: input, shape index: {}]   ;;  %s445_s6 = inlined_call_operand.<no memory space> [shape: f32[1,1], index: 6, kind: input, shape index: {}]   ;;  %s446_s7 = inlined_call_operand.hbm [shape: f32[1,1,8], index: 7, kind: output, shape index: {}]  }
   0x1   :  { %v12_v0 = vstv %s445_s6 }
   0x2   :  { %13 = vst [vmem:[#allocation2] sm:$0x1] %v12_v0 }
   0x3   :  { %14 = vsyncpa [#allocation4], 0 }
   0x4   :  { %15 = vsyncpa [#allocation7], 0  ;;  %s32_s28 = sshll.u32 %s440_s1, 4  ;;  %s33_s28 = int_to_ptr.hbm [resolvable:$true] %s32_s28 }
   0x5   :  { %16 = vsyncpa [#allocation5], 0  ;;  %s364_s29 = smov [#allocation6]   ;;  %s22_s10 = sshll.u32 %s439_s0, 4  ;;  %s23_s10 = int_to_ptr.hbm [resolvable:$true] %s22_s10 }
   0x6   :  { %s34_s30 = sshll.u32 %s364_s29, 4  ;;  %s365_s11 = smov 64   ;;  %s35_s30 = int_to_ptr.vmem [resolvable:$true] %s34_s30 }
   0x7   :  { %s366_s12 = smov 4   ;;  %s367_s6 = smov [#allocation3]  }
   0x8   :  { %40 = dma.hbm_to_vmem [thread:$0]  %s33_s28, 256, %s35_s30, [#allocation7], %s365_s11, %s365_s11, %s366_s12  }
   0x9   :  { %s24_s13 = sshll.u32 %s367_s6, 4  ;;  %s47_s16 = sshll.u32 %s442_s3, 4  ;;  %s25_s13 = int_to_ptr.vmem [resolvable:$true] %s24_s13  ;;  %s48_s16 = int_to_ptr.hbm [resolvable:$true] %s47_s16 }
   0xa   :  { %27 = dma.hbm_to_vmem [thread:$0]  %s23_s10, 128, %s25_s13, [#allocation4]  }
   0xb   :  { %s368_s1 = smov [#allocation8]  }
   0xc   :  { %s49_s17 = sshll.u32 %s368_s1, 4  ;;  %s50_s17 = int_to_ptr.vmem [resolvable:$true] %s49_s17 }
   0xd   :  { %55 = dma.hbm_to_vmem [thread:$0]  %s48_s16, 256, %s50_s17, [#allocation7], %s365_s11, %s365_s11, %s366_s12  }
   0xe   :  { %358 = dma.done.wait [#allocation4], 128  }
   0xf   :  { %359 = vsyncadd [#allocation4], 4294967168 }
  0x10   :  { %360 = dma.done.wait [#allocation7], 512  }
  0x11   :  { %361 = vsyncadd [#allocation7], 4294966784  ;;  %v241_v1 = vld [vmem:[#allocation6 + $0x8] sm:$0xff]  ;;  %v240_v2 = vld [vmem:[#allocation6] sm:$0xff]  ;;  %vm97_vm0 = vcmask 261120   ;;  %v369_v14 = vmov 0  }
  0x12   :  { %107 = vmatpush.bf16.msra.mxu0 %v241_v1  ;;  %v75_v3 = vld [vmem:[#allocation3] sm:$0xff]  ;;  %v242_v6 = vld [vmem:[#allocation8] sm:$0xff]  ;;  %251 = vset.pattern.permute.xlu0 %v369_v14  ;;  %s209_s23 = sshll.u32 %s446_s7, 4  ;;  %vm200_vm4 = vcmask 57344   ;;  %s210_s23 = int_to_ptr.hbm [resolvable:$true] %s209_s23 }
  0x13   :  { %v76_v4 = vpack.c.bf16 %v75_v3, %v75_v3  ;;  %v243_v5 = vld [vmem:[#allocation8 + $0x8] sm:$0xff]  ;;  %v252_v7 = vld [vmem:[%s441_s2] ss:$0 sm:$0xff] }
  0x14   :  { %145 = vmatpush.bf16.msra.mxu1 %v243_v5  ;;  %v155_v13 = vld [vmem:[#allocation2] sm:$0x1] }
  0x15   :  { %158 = vperm.xlu0 %251, %v155_v13   ;;  %v253_v15 = vld [vmem:[%s443_s4] ss:$0 sm:$0xff]  ;;  %s370_s4 = smov [#allocation9]  }
  0x16   :  { %108 = vmatpush.bf16.msra.mxu0 %v240_v2  ;;  %v153_v22 = vld [vmem:[%s444_s5] sm:$0x1]  ;;  %s207_s5 = sshll.u32 %s370_s4, 4  ;;  %s208_s5 = int_to_ptr.vmem [resolvable:$true] %s207_s5 }
  0x18   :  { %146 = vmatpush.bf16.msra.mxu1 %v242_v6 }
  0x19   :  { %228 = vmatmul.msk.bf16.vlgmr.msra.gmra.mxu0 %vm97_vm0, %v76_v4 }
  0x87   :  { %v159_v23 = vpop.permute.xlu0 %158 }
  0x88   :  { %v161_v24 = vperm.slane %v159_v23, 0 }
  0x96   :  { %v110_v8 = vpop.f32.mrf.mxu0 }
  0x97   :  { %v111_v9 = vadd.f32 %v252_v7, %v110_v8 }
  0x99   :  { %254 = vtanh.f32 %v111_v9 }
  0x9e   :  { %v112_v10 = vpop.f32.mrf.mxu0 }
  0x9f   :  { %v255_v11 = vpop.eup %254 }
  0xa0   :  { %v115_v12 = vpack.c.bf16 %v255_v11, %v255_v11 }
  0xa2   :  { %237 = vmatmul.msk.bf16.vlgmr.msra.gmra.mxu1 %vm97_vm0, %v115_v12 }
 0x11f   :  { %v148_v16 = vpop.f32.mrf.mxu1 }
 0x120   :  { %v149_v17 = vadd.f32 %v253_v15, %v148_v16 }
 0x122   :  { %256 = vtanh.f32 %v149_v17 }
 0x127   :  { %v150_v18 = vpop.f32.mrf.mxu1 }
 0x128   :  { %v257_v19 = vpop.eup %256 }
 0x129   :  { %v154_v20 = vpack.c.bf16 %v257_v19, %v257_v19 }
 0x12b   :  { %v166_v21 = vsel %vm97_vm0, %v154_v20, 0 }
 0x12c   :  { %175 = vmatpush.bf16.xpose.msra.mxu2 %v166_v21 }
 0x133   :  { %238 = vmatmul.msk.bf16.vlgmr.msra.gmra.mxu2 %vm97_vm0, %v153_v22 }
 0x1b6   :  { %v177_v25 = vpop.f32.mrf.mxu2 }
 0x1b7   :  { %v178_v26 = vadd.f32 %v177_v25, %v161_v24 }
 0x1b9   :  { %v239_v27 = vmul.f32 -1.442695, %v178_v26 }
 0x1bb   :  { %258 = vpow2.f32 %v239_v27 }
 0x1be   :  { %v179_v28 = vpop.f32.mrf.mxu2 }
 0x1c1   :  { %v259_v29 = vpop.eup %258 }
 0x1c2   :  { %v184_v30 = vadd.f32 1.0, %v259_v29 }
 0x1c4   :  { %260 = vrcp.f32 %v184_v30  ;;  %v196_v34 = vand.u32 2147483648, %v184_v30  ;;  %v194_v36 = vand.u32 2147483647, %v184_v30  ;;  %vm190_vm2 = vweird.f32 %v184_v30 }
 0x1c6   :  { %v197_v38 = vor.u32 1.1754944e-38, %v196_v34  ;;  %vm195_vm5 = vcmp.eq.f32.partialorder %v194_v36, 8.507059e+37 }
 0x1ca   :  { %v261_v31 = vpop.eup %260 }
 0x1cb   :  { %v186_v32 = vmul.f32 %v261_v31, %v184_v30  ;;  %vm191_vm1 = vweird.f32 %v261_v31 }
 0x1cc   :  { %vm192_vm3 = vmor %vm190_vm2, %vm191_vm1 }
 0x1cd   :  { %v187_v33 = vsub.f32 1.0, %v186_v32 }
 0x1cf   :  { %v188_v35 = vmul.f32 %v261_v31, %v187_v33 }
 0x1d1   :  { %v189_v37 = vadd.f32 %v261_v31, %v188_v35 }
 0x1d3   :  { %v193_v39 = vsel %vm192_vm3, %v261_v31, %v189_v37 }
 0x1d4   :  { %v198_v40 = vsel %vm195_vm5, %v197_v38, %v193_v39 }
 0x1d5   :  { %201 = vst.msk [vmem:[#allocation9] sm:$0x1] %vm200_vm4, %v198_v40 }
 0x1d6   :  { %212 = dma.vmem_to_hbm [thread:$0]  %s208_s5, 16, %s210_s23, [#allocation5]  }
 0x1d7   :  { %362 = dma.done.wait [#allocation5], 16  }
 0x1d8   :  { %363 = vsyncadd [#allocation5], 4294967280 }
 0x1d9   :  { %217 = vsyncpa [#allocation4], 1 }
 0x1da   :  { %218 = vsyncpa [#allocation7], 1 }
 0x1db   :  { %219 = vsyncpa [#allocation5], 1 }

</bundles_post_ra>
